<compile_context>
chip_gen: v7x
topology: tpu7x:2x2x1
jax: 0.10.0
libtpu: 0.0.40
codegen_flags: <defaults>
</compile_context>

<pallas_src>
import jax
import jax.numpy as jnp
from jax.experimental import pallas as pl
from jax.experimental.pallas import tpu as pltpu

LANES = 1024  # lane-dense last dim: large multiple of 128


def expsin_kernel(a_ref, x_ref, o_ref):
    # a_ref: (1, 1) f32 in SMEM; x_ref/o_ref: VMEM tile (2-D slab or 1-D chunk).
    # Fold the negation into the scalar (scalar-unit op): exp(-sin(a*x)) ==
    # exp(sin((-a)*x)).
    neg_a = -a_ref[0, 0]
    o_ref[...] = jnp.exp(jnp.sin(neg_a * x_ref[...])).astype(o_ref.dtype)


def _chip_config():
    """Generation-aware tile sizing.

    Returns (max_block_rows, vmem_limit_bytes_or_None, num_tensorcores)."""
    kind = ""
    try:
        kind = jax.devices()[0].device_kind.lower()
    except Exception:
        pass
    if "v7" in kind or "7x" in kind:
        # 4 MiB f32 tile; 16 MiB double-buffered in+out << 64 MiB physical VMEM.
        return 1024, 24 << 20, 2
    if "v6" in kind:
        # 4 MiB tile; 16 MiB footprint fits comfortably with a 24 MiB limit.
        return 1024, 24 << 20, 1
    # v5e / unknown: 2 MiB tile -> 8 MiB footprint fits the 16 MiB default
    # scoped VMEM with no special limits.
    return 512, None, 1


def _round_up(n, m):
    return ((n + m - 1) // m) * m


def _choose_block(extent, max_block, unit, num_tc):
    """Largest legal block (multiple of `unit` or full extent, <= max_block).

    Only splits for the dual-TensorCore v7x, keeping the grid-step count even
    so both cores get balanced work."""
    if extent <= unit:
        return extent  # full-extent block is always legal
    if extent <= max_block:
        if num_tc > 1 and extent >= 2 * unit:
            return min(_round_up(pl.cdiv(extent, 2), unit), extent)
        return extent
    steps = pl.cdiv(extent, max_block)
    if num_tc > 1 and steps % 2 == 1:
        steps += 1
    return min(_round_up(pl.cdiv(extent, steps), unit), max_block)


def exp_sin_activation(x, a):
    """Apply f(x) = exp(-sin(a * x)) elementwise via a Pallas TPU kernel.

    Args:
      x: array of any shape (floating dtype; the module uses float32).
      a: scalar parameter (float or shape-(1,) array).
    Returns:
      array of same shape/dtype as x.
    """
    orig_shape = x.shape
    orig_dtype = x.dtype
    assert jnp.issubdtype(orig_dtype, jnp.floating), "ExpSinActivation expects a floating dtype"
    total = x.size
    if total == 0:
        return x

    max_rows, vmem_limit, num_tc = _chip_config()
    itemsize = jnp.dtype(orig_dtype).itemsize
    sub = 8 * max(1, 4 // itemsize)  # sublane multiple: 8 for f32, 16 for bf16

    a_arr = jnp.asarray(a, dtype=jnp.float32).reshape(1, 1)

    cp_kwargs = dict(dimension_semantics=("parallel",))
    if vmem_limit is not None:
        cp_kwargs["vmem_limit_bytes"] = vmem_limit
    compiler_params = pltpu.CompilerParams(**cp_kwargs)

    smem_spec = pl.BlockSpec(memory_space=pltpu.MemorySpace.SMEM)

    if total % LANES == 0:
        # Lane-dense 2-D slab (rows, 1024): full-width unmasked vector stores,
        # zero-copy reshape (no pad, no tail slice).
        rows = total // LANES
        x2d = x.reshape(rows, LANES)
        block_rows = _choose_block(rows, max_rows, sub, num_tc)
        grid = (pl.cdiv(rows, block_rows),)
        out = pl.pallas_call(
            expsin_kernel,
            out_shape=jax.ShapeDtypeStruct((rows, LANES), orig_dtype),
            grid=grid,
            in_specs=[
                smem_spec,                                            # scalar `a`
                pl.BlockSpec((block_rows, LANES), lambda i: (i, 0)),  # x tile
            ],
            out_specs=pl.BlockSpec((block_rows, LANES), lambda i: (i, 0)),
            compiler_params=compiler_params,
        )(a_arr, x2d)
    else:
        # Pad-free fallback: 1-D flattened view; Pallas masks the partial last
        # block (chunk is a multiple of 1024, or the full extent for tiny x).
        xf = x.reshape(total)
        chunk = _choose_block(total, max_rows * LANES, LANES, num_tc)
        grid = (pl.cdiv(total, chunk),)
        out = pl.pallas_call(
            expsin_kernel,
            out_shape=jax.ShapeDtypeStruct((total,), orig_dtype),
            grid=grid,
            in_specs=[
                smem_spec,
                pl.BlockSpec((chunk,), lambda i: (i,)),
            ],
            out_specs=pl.BlockSpec((chunk,), lambda i: (i,)),
            compiler_params=compiler_params,
        )(a_arr, xf)

    return out.reshape(orig_shape)


if __name__ == "__main__":
    key = jax.random.PRNGKey(0)
    # Module's __init__: a * torch.ones(1), a = 1.0 (trainable parameter)
    a_param = jnp.ones((1,), dtype=jnp.float32) * 1.0

    # Shape consistent with the module's typical NCHW input.
    x = jax.random.normal(key, (2, 4, 16, 16), dtype=jnp.float32)
    out = jax.block_until_ready(exp_sin_activation(x, a_param))
    ref = jnp.exp(-jnp.sin(a_param[0] * x))
    assert out.shape == x.shape and out.dtype == x.dtype
    assert jnp.allclose(out, ref, atol=1e-5, rtol=1e-5)

    # Non-divisible total: exercises the pad-free 1-D masked-block path.
    x_odd = jax.random.normal(jax.random.PRNGKey(1), (3, 5, 17, 13), dtype=jnp.float32)
    out_odd = jax.block_until_ready(exp_sin_activation(x_odd, a_param))
    ref_odd = jnp.exp(-jnp.sin(a_param[0] * x_odd))
    assert out_odd.shape == x_odd.shape and out_odd.dtype == x_odd.dtype
    assert jnp.allclose(out_odd, ref_odd, atol=1e-5, rtol=1e-5)

    print("KERNEL_OK")
</pallas_src>

<mosaic_0001>
module attributes {stable_mosaic.version = 11 : i64} {
  func.func @expsin_kernel(%arg0: i32, %arg1: memref<1x1xf32, #tpu.memory_space<smem>>, %arg2: memref<2x1024xf32, #tpu.memory_space<vmem>>, %arg3: memref<2x1024xf32, #tpu.memory_space<vmem>>) attributes {dimension_semantics = [#tpu.dimension_semantics<parallel>], iteration_bounds = array<i64: 1>, scalar_prefetch = 0 : i64, scratch_operands = 0 : i64, tpu.core_type = #tpu.core_type<tc>, window_params = [{transform_indices = @transform_0, window_bounds = array<i64: 1, 1>}, {transform_indices = @transform_1, window_bounds = array<i64: 2, 1024>}, {transform_indices = @transform_2, window_bounds = array<i64: 2, 1024>}]} {
    %c0 = arith.constant 0 : index
    %c0_0 = arith.constant 0 : index
    %0 = memref.load %arg1[%c0, %c0_0] : memref<1x1xf32, #tpu.memory_space<smem>>
    %cst = arith.constant 0.000000e+00 : f32
    %1 = arith.subf %cst, %0 : f32
    %c0_1 = arith.constant 0 : index
    %c0_2 = arith.constant 0 : index
    %2 = vector.load %arg2[%c0_1, %c0_2] : memref<2x1024xf32, #tpu.memory_space<vmem>>, vector<2x1024xf32>
    %3 = vector.broadcast %1 : f32 to vector<2x1024xf32>
    %4 = arith.mulf %3, %2 : vector<2x1024xf32>
    %5 = math.sin %4 : vector<2x1024xf32>
    %6 = math.exp %5 : vector<2x1024xf32>
    %c0_3 = arith.constant 0 : index
    %c0_4 = arith.constant 0 : index
    %7 = vector.load %arg3[%c0_3, %c0_4] : memref<2x1024xf32, #tpu.memory_space<vmem>>, vector<2x1024xf32>
    tpu.vector_store %arg3[%c0_3, %c0_4], %6 {strides = array<i32>} : memref<2x1024xf32, #tpu.memory_space<vmem>>, vector<2x1024xf32>,
    return
  }
  func.func @transform_0(%arg0: i32) -> (i32, i32) {
    %c0_i32 = arith.constant 0 : i32
    %c0_i32_0 = arith.constant 0 : i32
    %c0_i32_1 = arith.constant 0 : i32
    return %c0_i32, %c0_i32_0 : i32, i32
  }
  func.func @transform_1(%arg0: i32) -> (i32, i32) {
    %c0_i32 = arith.constant 0 : i32
    %c0_i32_0 = arith.constant 0 : i32
    return %arg0, %c0_i32 : i32, i32
  }
  func.func @transform_2(%arg0: i32) -> (i32, i32) {
    %c0_i32 = arith.constant 0 : i32
    %c0_i32_0 = arith.constant 0 : i32
    return %arg0, %c0_i32 : i32, i32
  }
}

</mosaic_0001>

<bundles_post_ra>
// kernel: tpu_custom_call.1
= control target key start
LH: loop header
LB: loop body
LE: loop exit
PB: predicated region body
PF: predicated region fallthrough
CT: control target
= control target key end

     0   :  { %8 = vsyncpa [#allocation4], 0  ;;  %s465_s0 = inlined_call_operand.<no memory space> [shape: f32[1,1], index: 0, kind: input, shape index: {}]   ;;  %s466_s1 = inlined_call_operand.hbm [shape: f32[2,1024], index: 1, kind: input, shape index: {}]   ;;  %s467_s2 = inlined_call_operand.hbm [shape: f32[2,1024], index: 2, kind: output, shape index: {}]  }
   0x1   :  { %9 = vsyncpa [#allocation5], 0  ;;  %s345_s9 = smov [#allocation3]   ;;  %s297_s13 = scalar_lea.hbm %s466_s1, 256 }
   0x2   :  { %s18_s10 = sshll.u32 %s345_s9, 4  ;;  %p298_p0 = scmp.ne.s32.totalorder %s466_s1, %s297_s13  ;;  %s19_s10 = int_to_ptr.vmem [resolvable:$true] %s18_s10 }
   0x3   :  { %p301_p1 = scmp.lt.u32.totalorder %s297_s13, %s466_s1 }
   0x5   :  { %p303_p2 = pnand %p301_p1, %p298_p0 }
   0x7   :  { %306 = shalt.err (!%p303_p2)
}
   0x8   :  { %s307_s18 = scalar_lea.vmem %s19_s10, 256  ;;  %p312_p4 = scmp.lt.s32.totalorder %s19_s10, %s19_s10 }
   0x9   :  { %p308_p3 = scmp.ne.s32.totalorder %s19_s10, %s307_s18  ;;  %p313_p5 = scmp.lt.s32.totalorder %s307_s18, %s307_s18 }
   0xb   :  { %p314_p6 = por %p313_p5, %p312_p4 }
   0xd   :  { %p315_p7 = pnand %p314_p6, %p308_p3 }
   0xf   :  { %318 = shalt.err (!%p315_p7)
}
  0x10   :  { %21 = dma.hbm_to_vmem [thread:$0]  %s466_s1, 256, %s19_s10, [#allocation4]  }
  0x11   :  { %341 = dma.done.wait [#allocation4], 256  }
  0x12   :  { %342 = vsyncadd [#allocation4], 4294967040  ;;  %s26_s23 = ssub.f32 0.0, %s465_s0  ;;  %v27_v1 = vld [vmem:[#allocation3] sm:$0xff]  ;;  %v28_v2 = vld [vmem:[#allocation3 + $0x8] sm:$0xff]  ;;  %s352_s0 = smov [#allocation6]  }
  0x13   :  { %v346_v27 = vmov 683565275   ;;  %v347_v29 = vmov 2475754826   ;;  %v348_v31 = vmov 2131351028  }
  0x14   :  { %v29_v0 = vstv %s26_s23  ;;  %v349_v33 = vmov 2102212464   ;;  %v350_v35 = vmov 920167782   ;;  %v351_v43 = vmov 1326507024  }
  0x15   :  { %v383_v3 = vmul.f32 %v29_v0, %v27_v1  ;;  %v385_v4 = vmul.f32 %v29_v0, %v28_v2  ;;  %s252_s1 = sshll.u32 %s352_s0, 4  ;;  %s253_s1 = int_to_ptr.vmem [resolvable:$true] %s252_s1 }
  0x16   :  { %s319_s24 = scalar_lea.vmem %s253_s1, 256  ;;  %p324_p9 = scmp.lt.s32.totalorder %s253_s1, %s253_s1 }
  0x17   :  { %v32_v5 = vand.u32 2147483647, %v383_v3  ;;  %v35_v6 = vand.u32 2139095040, %v383_v3  ;;  %v136_v7 = vand.u32 2147483647, %v385_v4  ;;  %v139_v8 = vand.u32 2139095040, %v385_v4  ;;  %p320_p8 = scmp.ne.s32.totalorder %s253_s1, %s319_s24  ;;  %p325_p10 = scmp.lt.s32.totalorder %s319_s24, %s319_s24 }
  0x18   :  { %vm34_vm14 = vcmp.lt.s32.totalorder %v383_v3, 0 }
  0x19   :  { %v36_v9 = vshrl.u32 %v35_v6, 23  ;;  %v39_v10 = vand.u32 8388607, %v32_v5  ;;  %v140_v11 = vshrl.u32 %v139_v8, 23  ;;  %v143_v12 = vand.u32 8388607, %v136_v7  ;;  %p326_p11 = por %p325_p10, %p324_p9 }
  0x1a   :  { %vm33_vm15 = vcmp.le.f32.partialorder %v32_v5, 0.7853982 }
  0x1b   :  { %v261_v13 = vadd.s32 4294967169, %v36_v9  ;;  %v265_v14 = vadd.s32 4294967169, %v140_v11  ;;  %v40_v16 = vor.u32 8388608, %v39_v10  ;;  %v144_v17 = vor.u32 8388608, %v143_v12  ;;  %p327_p12 = pnand %p326_p11, %p320_p8 }
  0x1d   :  { %v42_v15 = vadd.s32 1, %v261_v13  ;;  %v146_v18 = vadd.s32 1, %v265_v14  ;;  %v395_v23 = vshll.u32 %v40_v16, 8  ;;  %v397_v25 = vshll.u32 %v144_v17, 8 }
  0x1f   :  { %vm43_vm0 = vcmp.gt.s32.totalorder %v42_v15, 0  ;;  %vm147_vm1 = vcmp.gt.s32.totalorder %v146_v18, 0 }
  0x20   :  { %v44_v19 = vsel %vm43_vm0, %v42_v15, 0  ;;  %v148_v22 = vsel %vm147_vm1, %v146_v18, 0  ;;  %vm138_vm0 = vcmp.lt.s32.totalorder %v385_v4, 0  ;;  %vm137_vm1 = vcmp.le.f32.partialorder %v136_v7, 0.7853982 }
  0x21   :  { %v45_v20 = vshrl.u32 %v44_v19, 5  ;;  %v46_v21 = vand.u32 31, %v44_v19  ;;  %v150_v24 = vand.u32 31, %v148_v22  ;;  %v399_v37 = vshrl.u32 %v148_v22, 5 }
  0x23   :  { %v47_v26 = vsub.s32 32, %v46_v21  ;;  %v49_v28 = vshll.u32 %v346_v27, %v46_v21  ;;  %v52_v30 = vshll.u32 %v347_v29, %v46_v21  ;;  %v55_v32 = vshll.u32 %v348_v31, %v46_v21 }
  0x24   :  { %v58_v34 = vshll.u32 %v349_v33, %v46_v21  ;;  %v61_v36 = vshll.u32 %v350_v35, %v46_v21  ;;  %vm64_vm2 = vcmp.lt.s32.totalorder %v45_v20, 1  ;;  %vm65_vm3 = vcmp.lt.s32.totalorder %v45_v20, 2 }
  0x25   :  { %v48_v38 = vshrl.u32 %v346_v27, %v47_v26  ;;  %v50_v39 = vshrl.u32 %v347_v29, %v47_v26  ;;  %v53_v40 = vshrl.u32 %v348_v31, %v47_v26  ;;  %v56_v41 = vshrl.u32 %v349_v33, %v47_v26 }
  0x26   :  { %v59_v42 = vshrl.u32 %v350_v35, %v47_v26  ;;  %v62_v44 = vshrl.u32 %v351_v43, %v47_v26  ;;  %vm67_vm4 = vcmp.lt.s32.totalorder %v45_v20, 4  ;;  %v151_v48 = vsub.s32 32, %v150_v24 }
  0x27   :  { %v51_v45 = vor.u32 %v50_v39, %v49_v28  ;;  %v54_v46 = vor.u32 %v53_v40, %v52_v30  ;;  %v57_v47 = vor.u32 %v56_v41, %v55_v32  ;;  %vm66_vm5 = vcmp.lt.s32.totalorder %v45_v20, 3 }
  0x28   :  { %v60_v49 = vor.u32 %v59_v42, %v58_v34  ;;  %v63_v50 = vor.u32 %v62_v44, %v61_v36  ;;  %v153_v51 = vshll.u32 %v346_v27, %v150_v24  ;;  %v156_v59 = vshll.u32 %v347_v29, %v150_v24 }
  0x29   :  { %v68_v52 = vsel %vm64_vm2, %v48_v38, %v51_v45  ;;  %v69_v53 = vsel %vm67_vm4, %v57_v47, 2102212464  ;;  %v72_v54 = vsel %vm64_vm2, %v51_v45, %v54_v46  ;;  %v76_v55 = vsel %vm64_vm2, %v54_v46, %v57_v47 }
  0x2a   :  { %v70_v56 = vsel %vm66_vm5, %v54_v46, %v69_v53  ;;  %v73_v57 = vsel %vm67_vm4, %v60_v49, 920167782  ;;  %v77_v58 = vsel %vm67_vm4, %v63_v50, 1326507024  ;;  %v152_v62 = vshrl.u32 %v346_v27, %v151_v48 }
  0x2b   :  { %v74_v60 = vsel %vm66_vm5, %v57_v47, %v73_v57  ;;  %v78_v61 = vsel %vm66_vm5, %v60_v49, %v77_v58  ;;  %v154_v63 = vshrl.u32 %v347_v29, %v151_v48  ;;  %v71_v0 = vsel %vm65_vm3, %v68_v52, %v70_v56 }
  0x2c   :  { %v75_v1 = vsel %vm65_vm3, %v72_v54, %v74_v60  ;;  %v79_v2 = vsel %vm65_vm3, %v76_v55, %v78_v61  ;;  %v157_v6 = vshrl.u32 %v348_v31, %v151_v48  ;;  %v159_v14 = vshll.u32 %v348_v31, %v150_v24 }
  0x2d   :  { %v408_v8 = vmul.u32.u64.low %v395_v23, %v79_v2  ;;  %v409_v9 = vmul.u32.u64.high %v395_v23, %v79_v2, %v408_v8  ;;  %v412_v10 = vmul.u32.u64.low %v395_v23, %v75_v1  ;;  %v413_v11 = vmul.u32.u64.high %v395_v23, %v75_v1, %v412_v10 }
  0x2e   :  { %v155_v12 = vor.u32 %v154_v63, %v153_v51  ;;  %v158_v13 = vor.u32 %v157_v6, %v156_v59  ;;  %v160_v15 = vshrl.u32 %v349_v33, %v151_v48  ;;  %v162_v16 = vshll.u32 %v349_v33, %v150_v24 }
  0x2f   :  { %v163_v17 = vshrl.u32 %v350_v35, %v151_v48  ;;  %v165_v18 = vshll.u32 %v350_v35, %v150_v24  ;;  %v166_v19 = vshrl.u32 %v351_v43, %v151_v48  ;;  %v87_v20 = vmul.u32 %v395_v23, %v71_v0 }
  0x30   :  { %v161_v21 = vor.u32 %v160_v15, %v159_v14  ;;  %vm168_vm6 = vcmp.lt.s32.totalorder %v399_v37, 1  ;;  %vm169_vm7 = vcmp.lt.s32.totalorder %v399_v37, 2  ;;  %vm89_vm8 = vc.u32 %v409_v9, %v412_v10 }
  0x31   :  { %v90_v22 = vadd.s32 1, %v413_v11  ;;  %v164_v26 = vor.u32 %v163_v17, %v162_v16  ;;  %vm170_vm9 = vcmp.lt.s32.totalorder %v399_v37, 3  ;;  %v167_v27 = vor.u32 %v166_v19, %v165_v18 }
  0x32   :  { %vm171_vm10 = vcmp.lt.s32.totalorder %v399_v37, 4  ;;  %v172_v28 = vsel %vm168_vm6, %v152_v62, %v155_v12  ;;  %v176_v24 = vsel %vm168_vm6, %v155_v12, %v158_v13  ;;  %v180_v31 = vsel %vm168_vm6, %v158_v13, %v161_v21 }
  0x33   :  { %v91_v29 = vsel %vm89_vm8, %v90_v22, %v413_v11  ;;  %v173_v23 = vsel %vm171_vm10, %v161_v21, 2102212464  ;;  %v177_v30 = vsel %vm171_vm10, %v164_v26, 920167782  ;;  %v181_v35 = vsel %vm171_vm10, %v167_v27, 1326507024 }
  0x34   :  { %v92_v32 = vadd.s32 %v91_v29, %v87_v20  ;;  %v174_v33 = vsel %vm170_vm9, %v158_v13, %v173_v23  ;;  %v178_v34 = vsel %vm170_vm9, %v161_v21, %v177_v30  ;;  %v182_v39 = vsel %vm170_vm9, %v164_v26, %v181_v35 }
  0x35   :  { %v175_v36 = vsel %vm169_vm7, %v172_v28, %v174_v33  ;;  %v179_v38 = vsel %vm169_vm7, %v176_v24, %v178_v34  ;;  %v183_v41 = vsel %vm169_vm7, %v180_v31, %v182_v39  ;;  %v88_v60 = vadd.s32 %v412_v10, %v409_v9 }
  0x36   :  { %v93_v40 = vadd.s32 536870912, %v92_v32  ;;  %v430_v42 = vmul.u32.u64.low %v397_v25, %v179_v38  ;;  %v431_v43 = vmul.u32.u64.high %v397_v25, %v179_v38, %v430_v42  ;;  %v191_v47 = vmul.u32 %v397_v25, %v175_v36 }
  0x37   :  { %v434_v44 = vmul.u32.u64.low %v397_v25, %v183_v41  ;;  %v435_v45 = vmul.u32.u64.high %v397_v25, %v183_v41, %v434_v44  ;;  %vm124_vm5 = vweird.f32 %v383_v3  ;;  %vm228_vm9 = vweird.f32 %v385_v4 }
  0x38   :  { %v94_v46 = vshrl.u32 %v93_v40, 30  ;;  %v194_v49 = vadd.s32 1, %v431_v43 }
  0x39   :  { %vm193_vm11 = vc.u32 %v435_v45, %v430_v42  ;;  %v192_v16 = vadd.s32 %v430_v42, %v435_v45 }
  0x3a   :  { %v95_v48 = vshll.u32 %v94_v46, 30  ;;  %v195_v37 = vsel %vm193_vm11, %v194_v49, %v431_v43  ;;  %v118_v9 = vsub.s32 4, %v94_v46 }
  0x3b   :  { %v196_v51 = vadd.s32 %v195_v37, %v191_v47 }
  0x3c   :  { %v96_v50 = vsub.s32 %v92_v32, %v95_v48  ;;  %v119_v28 = vsel %vm34_vm14, %v118_v9, %v94_v46 }
  0x3d   :  { %v197_v53 = vadd.s32 536870912, %v196_v51  ;;  %v121_v31 = vsel %vm33_vm15, 0, %v119_v28 }
  0x3e   :  { %v98_v52 = vsub.s32 0, %v96_v50  ;;  %v125_v36 = vadd.s32 3, %v121_v31 }
  0x3f   :  { %v198_v55 = vshrl.u32 %v197_v53, 30 }
  0x40   :  { %v262_v54 = vmin.u32 %v98_v52, %v96_v50  ;;  %v126_v40 = vand.u32 3, %v125_v36 }
  0x41   :  { %v199_v57 = vshll.u32 %v198_v55, 30  ;;  %v222_v35 = vsub.s32 4, %v198_v55 }
  0x42   :  { %v100_v56 = vclz %v262_v54  ;;  %vm131_vm2 = vcmp.eq.s32.totalorder %v126_v40, 2  ;;  %vm128_vm3 = vcmp.eq.s32.totalorder %v126_v40, 0  ;;  %vm127_vm4 = vcmp.lt.s32.totalorder %v126_v40, 2 }
  0x43   :  { %v200_v59 = vsub.s32 %v196_v51, %v199_v57  ;;  %v223_v39 = vsel %vm138_vm0, %v222_v35, %v198_v55 }
  0x44   :  { %v263_v58 = vadd.s32 4294967294, %v100_v56  ;;  %v225_v43 = vsel %vm137_vm1, 0, %v223_v39 }
  0x45   :  { %v202_v61 = vsub.s32 0, %v200_v59  ;;  %v229_v47 = vadd.s32 3, %v225_v43 }
  0x46   :  { %vm264_vm12 = vcmp.lt.s32.totalorder %v263_v58, 0 }
  0x47   :  { %v103_v25 = vsel %vm264_vm12, 0, %v263_v58  ;;  %v266_v1 = vmin.u32 %v202_v61, %v200_v59  ;;  %v230_v37 = vand.u32 3, %v229_v47 }
  0x48   :  { %v104_v62 = vsub.s32 32, %v103_v25  ;;  %v105_v63 = vshll.u32 %v96_v50, %v103_v25  ;;  %v108_v0 = vsub.s32 4294967266, %v103_v25 }
  0x49   :  { %v204_v8 = vclz %v266_v1  ;;  %vm235_vm6 = vcmp.eq.s32.totalorder %v230_v37, 2  ;;  %vm232_vm7 = vcmp.eq.s32.totalorder %v230_v37, 0  ;;  %vm231_vm8 = vcmp.lt.s32.totalorder %v230_v37, 2 }
  0x4a   :  { %v106_v2 = vshrl.u32 %v88_v60, %v104_v62  ;;  %v109_v6 = vadd.s32 127, %v108_v0 }
  0x4b   :  { %v267_v13 = vadd.s32 4294967294, %v204_v8 }
  0x4c   :  { %v107_v11 = vor.u32 %v106_v2, %v105_v63  ;;  %v110_v12 = vshll.u32 %v109_v6, 23 }
  0x4d   :  { %vm268_vm13 = vcmp.lt.s32.totalorder %v267_v13, 0 }
  0x4e   :  { %v111_v14 = vor.u32 4788187, %v110_v12  ;;  %v114_v15 = vcvt.s32.f32 %v107_v11  ;;  %v207_v10 = vsel %vm268_vm13, 0, %v267_v13 }
  0x4f   :  { %v208_v18 = vsub.s32 32, %v207_v10  ;;  %v209_v19 = vshll.u32 %v200_v59, %v207_v10  ;;  %v212_v20 = vsub.s32 4294967266, %v207_v10 }
  0x50   :  { %v112_v17 = vand.u32 2147483647, %v111_v14 }
  0x51   :  { %v210_v22 = vshrl.u32 %v192_v16, %v208_v18  ;;  %v213_v26 = vadd.s32 127, %v212_v20 }
  0x52   :  { %v115_v21 = vmul.f32 %v114_v15, %v112_v17 }
  0x53   :  { %v211_v24 = vor.u32 %v210_v22, %v209_v19  ;;  %v214_v29 = vshll.u32 %v213_v26, 23 }
  0x54   :  { %v116_v27 = vxor.u32 2147483648, %v115_v21 }
  0x55   :  { %v215_v32 = vor.u32 4788187, %v214_v29  ;;  %v218_v33 = vcvt.s32.f32 %v211_v24 }
  0x56   :  { %v117_v23 = vsel %vm34_vm14, %v116_v27, %v115_v21 }
  0x57   :  { %v120_v30 = vsel %vm33_vm15, %v383_v3, %v117_v23  ;;  %v216_v34 = vand.u32 2147483647, %v215_v32 }
  0x58   :  { %285 = vcosq.f32 %v120_v30 }
  0x59   :  { %287 = vsinq.f32 %v120_v30  ;;  %v219_v38 = vmul.f32 %v218_v33, %v216_v34 }
  0x5b   :  { %v220_v5 = vxor.u32 2147483648, %v219_v38 }
  0x5d   :  { %v221_v41 = vsel %vm138_vm0, %v220_v5, %v219_v38 }
  0x5e   :  { %v224_v42 = vsel %vm137_vm1, %v385_v4, %v221_v41 }
  0x5f   :  { %289 = vcosq.f32 %v224_v42 }
  0x60   :  { %291 = vsinq.f32 %v224_v42 }
  0x62   :  { %v286_v44 = vpop.eup %285 }
  0x63   :  { %v288_v45 = vpop.eup %287  ;;  %v132_v46 = vxor.u32 2147483648, %v286_v44 }
  0x64   :  { %v129_v48 = vxor.u32 2147483648, %v288_v45 }
  0x65   :  { %v133_v7 = vsel %vm131_vm2, %v132_v46, %v288_v45 }
  0x66   :  { %v130_v49 = vsel %vm128_vm3, %v286_v44, %v129_v48 }
  0x67   :  { %v134_v50 = vsel %vm127_vm4, %v130_v49, %v133_v7 }
  0x68   :  { %v135_v51 = vsel %vm124_vm5, nan, %v134_v50 }
  0x69   :  { %v240_v52 = vmul.f32 1.442695, %v135_v51  ;;  %v290_v53 = vpop.eup %289 }
  0x6a   :  { %v292_v54 = vpop.eup %291  ;;  %v236_v55 = vxor.u32 2147483648, %v290_v53 }
  0x6b   :  { %293 = vpow2.f32 %v240_v52  ;;  %v233_v56 = vxor.u32 2147483648, %v292_v54 }
  0x6c   :  { %v237_v57 = vsel %vm235_vm6, %v236_v55, %v292_v54 }
  0x6d   :  { %v234_v58 = vsel %vm232_vm7, %v290_v53, %v233_v56 }
  0x6e   :  { %v238_v59 = vsel %vm231_vm8, %v234_v58, %v237_v57 }
  0x6f   :  { %v239_v3 = vsel %vm228_vm9, nan, %v238_v59 }
  0x70   :  { %v242_v60 = vmul.f32 1.442695, %v239_v3 }
  0x72   :  { %295 = vpow2.f32 %v242_v60 }
  0x75   :  { %v294_v25 = vpop.eup %293 }
  0x76   :  { %244 = vst [vmem:[#allocation6] sm:$0xff] %v294_v25 }
  0x7c   :  { %v296_v61 = vpop.eup %295 }
  0x7d   :  { %245 = vst [vmem:[#allocation6 + $0x8] sm:$0xff] %v296_v61 }
  0x7e   :  { %330 = shalt.err (!%p327_p12)
}
  0x7f   :  { %s331_s27 = scalar_lea.hbm %s467_s2, 256 }
  0x80   :  { %p332_p13 = scmp.ne.s32.totalorder %s467_s2, %s331_s27  ;;  %p335_p0 = scmp.lt.u32.totalorder %s331_s27, %s467_s2 }
  0x82   :  { %p337_p1 = pnand %p335_p0, %p332_p13 }
  0x84   :  { %340 = shalt.err (!%p337_p1)
}
  0x85   :  { %255 = dma.vmem_to_hbm [thread:$0]  %s253_s1, 256, %s467_s2, [#allocation5]  }
  0x86   :  { %343 = dma.done.wait [#allocation5], 256  }
  0x87   :  { %344 = vsyncadd [#allocation5], 4294967040 }
  0x88   :  { %259 = vsyncpa [#allocation4], 1 }
  0x89   :  { %260 = vsyncpa [#allocation5], 1 }

</bundles_post_ra>
